<compile_context>
chip_gen: v6e
topology: v6e:2x2x1
jax: 0.10.0
libtpu: 0.0.40
codegen_flags: <defaults>
</compile_context>

<pallas_src>
import numpy as np
import jax
import jax.numpy as jnp
from jax import lax
from jax.experimental import pallas as pl
from jax.experimental.pallas import tpu as pltpu

IN_DIM = 67          # nn.RNN input size
HID = 200            # hidden_layer_size
D_PAD = 128          # padded input feature dim (lane multiple)
H_PAD = 256          # padded hidden dim (lane multiple)


def _rnn_kernel(x_ref, wih_ref, whh_ref, b_ref, wlin_ref, blin_ref, out_ref, pre_scr):
    # x_ref:    (S, D_PAD)      bf16, time-major input (batch==1 squeezed)
    # wih_ref:  (D_PAD, H_PAD)  bf16
    # whh_ref:  (H_PAD, H_PAD)  bf16
    # b_ref:    (1, H_PAD)      f32, combined b_ih + b_hh
    # wlin_ref: (1, H_PAD)      f32, final linear weight
    # blin_ref: (1, 1)          f32, final linear bias
    # out_ref:  (1, 1)          f32, prediction at the last time step
    # pre_scr:  (S, H_PAD)      f32 scratch: x @ Wih + b for every step
    seq_len = x_ref.shape[0]

    # Hoisted input projection: one M=S MXU matmul instead of S M=1 matmuls on the
    # serial critical path.  The bias is folded in here (added exactly once).
    pre_scr[...] = (
        jnp.dot(x_ref[...], wih_ref[...], preferred_element_type=jnp.float32)
        + b_ref[...]
    )

    def step(t, h):
        # h: (1, H_PAD) f32, carried in vregs (no VMEM round trip).
        pre_t = pre_scr[pl.ds(t, 1), :]
        rec = jnp.dot(h.astype(whh_ref.dtype), whh_ref[...],
                      preferred_element_type=jnp.float32)
        return jnp.tanh(pre_t + rec)

    h0 = jnp.zeros((1, H_PAD), jnp.float32)
    # Static trip count -> fully unrolled so adjacent steps' pre[t] loads, MXU
    # result pops and tanh can overlap around the strict h dependency.
    h = lax.fori_loop(0, seq_len, step, h0, unroll=True)

    # Final Linear(200 -> 1) on the last hidden state.
    out_ref[...] = jnp.sum(h * wlin_ref[...], axis=1, keepdims=True) + blin_ref[...]


def prepare_params(params):
    """One-time padding / layout / dtype conversion of the weights (NOT per call)."""
    wih = jnp.zeros((D_PAD, H_PAD), jnp.float32).at[:IN_DIM, :HID].set(params["w_ih"].T)
    whh = jnp.zeros((H_PAD, H_PAD), jnp.float32).at[:HID, :HID].set(params["w_hh"].T)
    b = jnp.zeros((1, H_PAD), jnp.float32).at[0, :HID].set(params["b_ih"] + params["b_hh"])
    wlin = jnp.zeros((1, H_PAD), jnp.float32).at[0, :HID].set(params["w_lin"][0])
    blin = params["b_lin"].reshape(1, 1).astype(jnp.float32)
    return {
        "wih": wih.astype(jnp.bfloat16),
        "whh": whh.astype(jnp.bfloat16),
        "b": b,
        "wlin": wlin,
        "blin": blin,
    }


@jax.jit
def simple_rnn_forward(input_seq, prep):
    """input_seq: (S, 67) float32.  Returns prediction at the last step, shape (1,)."""
    seq_len = input_seq.shape[0]
    x2 = input_seq.reshape(seq_len, -1).astype(jnp.float32)          # (S, 67)
    # Only the activations are padded per call; weights come pre-padded (bf16).
    x_pad = (jnp.zeros((seq_len, D_PAD), jnp.float32)
             .at[:, :IN_DIM].set(x2)
             .astype(jnp.bfloat16))

    out = pl.pallas_call(
        _rnn_kernel,
        out_shape=jax.ShapeDtypeStruct((1, 1), jnp.float32),
        grid_spec=pltpu.PrefetchScalarGridSpec(
            num_scalar_prefetch=0,
            grid=(1,),
            in_specs=[
                pl.BlockSpec((seq_len, D_PAD), lambda i: (0, 0)),
                pl.BlockSpec((D_PAD, H_PAD), lambda i: (0, 0)),
                pl.BlockSpec((H_PAD, H_PAD), lambda i: (0, 0)),
                pl.BlockSpec((1, H_PAD), lambda i: (0, 0)),
                pl.BlockSpec((1, H_PAD), lambda i: (0, 0)),
                pl.BlockSpec((1, 1), lambda i: (0, 0)),
            ],
            out_specs=pl.BlockSpec((1, 1), lambda i: (0, 0)),
            scratch_shapes=[pltpu.VMEM((seq_len, H_PAD), jnp.float32)],
        ),
        compiler_params=pltpu.CompilerParams(dimension_semantics=("arbitrary",)),
    )(x_pad, prep["wih"], prep["whh"], prep["b"], prep["wlin"], prep["blin"])

    return out.reshape(1)   # matches PyTorch predictions[-1] -> shape (1,)


def _reference_forward(input_seq, params):
    """Pure-JAX f32 reference of the PyTorch forward pass."""
    seq_len = input_seq.shape[0]
    x = input_seq.reshape(seq_len, -1)
    h = jnp.zeros((HID,), jnp.float32)
    for t in range(seq_len):
        h = jnp.tanh(params["w_ih"] @ x[t] + params["b_ih"]
                     + params["w_hh"] @ h + params["b_hh"])
    return params["w_lin"] @ h + params["b_lin"]   # shape (1,)


def init_params(key):
    """Deterministic init; shapes match nn.RNN(67, 200) + nn.Linear(200, 1)."""
    ks = jax.random.split(key, 6)
    s_rnn = 1.0 / np.sqrt(HID)
    s_lin = 1.0 / np.sqrt(HID)
    return {
        "w_ih": jax.random.uniform(ks[0], (HID, IN_DIM), jnp.float32, -s_rnn, s_rnn),
        "w_hh": jax.random.uniform(ks[1], (HID, HID), jnp.float32, -s_rnn, s_rnn),
        "b_ih": jax.random.uniform(ks[2], (HID,), jnp.float32, -s_rnn, s_rnn),
        "b_hh": jax.random.uniform(ks[3], (HID,), jnp.float32, -s_rnn, s_rnn),
        "w_lin": jax.random.uniform(ks[4], (1, HID), jnp.float32, -s_lin, s_lin),
        "b_lin": jax.random.uniform(ks[5], (1,), jnp.float32, -s_lin, s_lin),
    }


if __name__ == "__main__":
    key = jax.random.PRNGKey(0)
    pkey, xkey = jax.random.split(key)
    params = init_params(pkey)
    prep = prepare_params(params)          # one-time weight padding / bf16 cast

    SEQ = 8
    input_seq = jax.random.normal(xkey, (SEQ, IN_DIM), jnp.float32)

    pred = simple_rnn_forward(input_seq, prep)
    pred = jax.block_until_ready(pred)

    ref = _reference_forward(input_seq, params)
    assert pred.shape == (1,)
    # bf16 weights/activations with f32 accumulation: allow small drift vs f32 ref.
    assert np.allclose(np.asarray(pred), np.asarray(ref), rtol=5e-2, atol=5e-2), (pred, ref)

    print("KERNEL_OK")
</pallas_src>

<mosaic_0001>
module attributes {stable_mosaic.version = 11 : i64} {
  func.func @_rnn_kernel(%arg0: i32, %arg1: memref<8x128xbf16, #tpu.memory_space<vmem>>, %arg2: memref<128x256xbf16, #tpu.memory_space<vmem>>, %arg3: memref<256x256xbf16, #tpu.memory_space<vmem>>, %arg4: memref<1x256xf32, #tpu.memory_space<vmem>>, %arg5: memref<1x256xf32, #tpu.memory_space<vmem>>, %arg6: memref<1x1xf32, #tpu.memory_space<vmem>>, %arg7: memref<1x1xf32, #tpu.memory_space<vmem>>, %arg8: memref<8x256xf32, #tpu.memory_space<vmem>>) attributes {dimension_semantics = [#tpu.dimension_semantics<arbitrary>], iteration_bounds = array<i64: 1>, scalar_prefetch = 0 : i64, scratch_operands = 1 : i64, tpu.core_type = #tpu.core_type<tc>, window_params = [{pipeline_mode = #tpu.pipeline_mode<synchronous>, transform_indices = @transform_0, window_bounds = array<i64: 8, 128>}, {pipeline_mode = #tpu.pipeline_mode<synchronous>, transform_indices = @transform_1, window_bounds = array<i64: 128, 256>}, {pipeline_mode = #tpu.pipeline_mode<synchronous>, transform_indices = @transform_2, window_bounds = array<i64: 256, 256>}, {pipeline_mode = #tpu.pipeline_mode<synchronous>, transform_indices = @transform_3, window_bounds = array<i64: 1, 256>}, {pipeline_mode = #tpu.pipeline_mode<synchronous>, transform_indices = @transform_4, window_bounds = array<i64: 1, 256>}, {pipeline_mode = #tpu.pipeline_mode<synchronous>, transform_indices = @transform_5, window_bounds = array<i64: 1, 1>}, {pipeline_mode = #tpu.pipeline_mode<synchronous>, transform_indices = @transform_6, window_bounds = array<i64: 1, 1>}]} {
    %c0 = arith.constant 0 : index
    %c0_0 = arith.constant 0 : index
    %0 = vector.load %arg1[%c0, %c0_0] : memref<8x128xbf16, #tpu.memory_space<vmem>>, vector<8x128xbf16>
    %c0_1 = arith.constant 0 : index
    %c0_2 = arith.constant 0 : index
    %1 = vector.load %arg2[%c0_1, %c0_2] : memref<128x256xbf16, #tpu.memory_space<vmem>>, vector<128x256xbf16>
    %cst = arith.constant dense<0.000000e+00> : vector<8x256xf32>
    %2 = tpu.matmul %0, %1, %cst {dimension_numbers = #tpu.dot_dimension_numbers<[1], [0], [0], [1], [0, 0, 1, 1], [], []>} : vector<8x128xbf16>, vector<128x256xbf16>, vector<8x256xf32> -> vector<8x256xf32>
    %c0_3 = arith.constant 0 : index
    %c0_4 = arith.constant 0 : index
    %3 = vector.load %arg4[%c0_3, %c0_4] : memref<1x256xf32, #tpu.memory_space<vmem>>, vector<1x256xf32>
    %4 = vector.broadcast %3 : vector<1x256xf32> to vector<8x256xf32>
    %5 = arith.addf %2, %4 : vector<8x256xf32>
    %c0_5 = arith.constant 0 : index
    %c0_6 = arith.constant 0 : index
    %6 = vector.load %arg8[%c0_5, %c0_6] : memref<8x256xf32, #tpu.memory_space<vmem>>, vector<8x256xf32>
    tpu.vector_store %arg8[%c0_5, %c0_6], %5 {strides = array<i32>} : memref<8x256xf32, #tpu.memory_space<vmem>>, vector<8x256xf32>,
    %cst_7 = arith.constant 0.000000e+00 : f32
    %7 = vector.broadcast %cst_7 : f32 to vector<1x256xf32>
    %c0_i32 = arith.constant 0 : i32
    %8 = arith.index_cast %c0_i32 : i32 to index
    %c0_8 = arith.constant 0 : index
    %9 = vector.load %arg8[%8, %c0_8] : memref<8x256xf32, #tpu.memory_space<vmem>>, vector<1x256xf32>
    %10 = arith.truncf %7 : vector<1x256xf32> to vector<1x256xbf16>
    %c0_9 = arith.constant 0 : index
    %c0_10 = arith.constant 0 : index
    %11 = vector.load %arg3[%c0_9, %c0_10] : memref<256x256xbf16, #tpu.memory_space<vmem>>, vector<256x256xbf16>
    %cst_11 = arith.constant dense<0.000000e+00> : vector<1x256xf32>
    %12 = tpu.matmul %10, %11, %cst_11 {dimension_numbers = #tpu.dot_dimension_numbers<[1], [0], [0], [1], [0, 0, 1, 1], [], []>} : vector<1x256xbf16>, vector<256x256xbf16>, vector<1x256xf32> -> vector<1x256xf32>
    %13 = arith.addf %9, %12 : vector<1x256xf32>
    %14 = math.tanh %13 : vector<1x256xf32>
    %c1_i32 = arith.constant 1 : i32
    %15 = arith.index_cast %c1_i32 : i32 to index
    %c0_12 = arith.constant 0 : index
    %16 = vector.load %arg8[%15, %c0_12] : memref<8x256xf32, #tpu.memory_space<vmem>>, vector<1x256xf32>
    %17 = arith.truncf %14 : vector<1x256xf32> to vector<1x256xbf16>
    %c0_13 = arith.constant 0 : index
    %c0_14 = arith.constant 0 : index
    %18 = vector.load %arg3[%c0_13, %c0_14] : memref<256x256xbf16, #tpu.memory_space<vmem>>, vector<256x256xbf16>
    %cst_15 = arith.constant dense<0.000000e+00> : vector<1x256xf32>
    %19 = tpu.matmul %17, %18, %cst_15 {dimension_numbers = #tpu.dot_dimension_numbers<[1], [0], [0], [1], [0, 0, 1, 1], [], []>} : vector<1x256xbf16>, vector<256x256xbf16>, vector<1x256xf32> -> vector<1x256xf32>
    %20 = arith.addf %16, %19 : vector<1x256xf32>
    %21 = math.tanh %20 : vector<1x256xf32>
    %c2_i32 = arith.constant 2 : i32
    %22 = arith.index_cast %c2_i32 : i32 to index
    %c0_16 = arith.constant 0 : index
    %23 = vector.load %arg8[%22, %c0_16] : memref<8x256xf32, #tpu.memory_space<vmem>>, vector<1x256xf32>
    %24 = arith.truncf %21 : vector<1x256xf32> to vector<1x256xbf16>
    %c0_17 = arith.constant 0 : index
    %c0_18 = arith.constant 0 : index
    %25 = vector.load %arg3[%c0_17, %c0_18] : memref<256x256xbf16, #tpu.memory_space<vmem>>, vector<256x256xbf16>
    %cst_19 = arith.constant dense<0.000000e+00> : vector<1x256xf32>
    %26 = tpu.matmul %24, %25, %cst_19 {dimension_numbers = #tpu.dot_dimension_numbers<[1], [0], [0], [1], [0, 0, 1, 1], [], []>} : vector<1x256xbf16>, vector<256x256xbf16>, vector<1x256xf32> -> vector<1x256xf32>
    %27 = arith.addf %23, %26 : vector<1x256xf32>
    %28 = math.tanh %27 : vector<1x256xf32>
    %c3_i32 = arith.constant 3 : i32
    %29 = arith.index_cast %c3_i32 : i32 to index
    %c0_20 = arith.constant 0 : index
    %30 = vector.load %arg8[%29, %c0_20] : memref<8x256xf32, #tpu.memory_space<vmem>>, vector<1x256xf32>
    %31 = arith.truncf %28 : vector<1x256xf32> to vector<1x256xbf16>
    %c0_21 = arith.constant 0 : index
    %c0_22 = arith.constant 0 : index
    %32 = vector.load %arg3[%c0_21, %c0_22] : memref<256x256xbf16, #tpu.memory_space<vmem>>, vector<256x256xbf16>
    %cst_23 = arith.constant dense<0.000000e+00> : vector<1x256xf32>
    %33 = tpu.matmul %31, %32, %cst_23 {dimension_numbers = #tpu.dot_dimension_numbers<[1], [0], [0], [1], [0, 0, 1, 1], [], []>} : vector<1x256xbf16>, vector<256x256xbf16>, vector<1x256xf32> -> vector<1x256xf32>
    %34 = arith.addf %30, %33 : vector<1x256xf32>
    %35 = math.tanh %34 : vector<1x256xf32>
    %c4_i32 = arith.constant 4 : i32
    %36 = arith.index_cast %c4_i32 : i32 to index
    %c0_24 = arith.constant 0 : index
    %37 = vector.load %arg8[%36, %c0_24] : memref<8x256xf32, #tpu.memory_space<vmem>>, vector<1x256xf32>
    %38 = arith.truncf %35 : vector<1x256xf32> to vector<1x256xbf16>
    %c0_25 = arith.constant 0 : index
    %c0_26 = arith.constant 0 : index
    %39 = vector.load %arg3[%c0_25, %c0_26] : memref<256x256xbf16, #tpu.memory_space<vmem>>, vector<256x256xbf16>
    %cst_27 = arith.constant dense<0.000000e+00> : vector<1x256xf32>
    %40 = tpu.matmul %38, %39, %cst_27 {dimension_numbers = #tpu.dot_dimension_numbers<[1], [0], [0], [1], [0, 0, 1, 1], [], []>} : vector<1x256xbf16>, vector<256x256xbf16>, vector<1x256xf32> -> vector<1x256xf32>
    %41 = arith.addf %37, %40 : vector<1x256xf32>
    %42 = math.tanh %41 : vector<1x256xf32>
    %c5_i32 = arith.constant 5 : i32
    %43 = arith.index_cast %c5_i32 : i32 to index
    %c0_28 = arith.constant 0 : index
    %44 = vector.load %arg8[%43, %c0_28] : memref<8x256xf32, #tpu.memory_space<vmem>>, vector<1x256xf32>
    %45 = arith.truncf %42 : vector<1x256xf32> to vector<1x256xbf16>
    %c0_29 = arith.constant 0 : index
    %c0_30 = arith.constant 0 : index
    %46 = vector.load %arg3[%c0_29, %c0_30] : memref<256x256xbf16, #tpu.memory_space<vmem>>, vector<256x256xbf16>
    %cst_31 = arith.constant dense<0.000000e+00> : vector<1x256xf32>
    %47 = tpu.matmul %45, %46, %cst_31 {dimension_numbers = #tpu.dot_dimension_numbers<[1], [0], [0], [1], [0, 0, 1, 1], [], []>} : vector<1x256xbf16>, vector<256x256xbf16>, vector<1x256xf32> -> vector<1x256xf32>
    %48 = arith.addf %44, %47 : vector<1x256xf32>
    %49 = math.tanh %48 : vector<1x256xf32>
    %c6_i32 = arith.constant 6 : i32
    %50 = arith.index_cast %c6_i32 : i32 to index
    %c0_32 = arith.constant 0 : index
    %51 = vector.load %arg8[%50, %c0_32] : memref<8x256xf32, #tpu.memory_space<vmem>>, vector<1x256xf32>
    %52 = arith.truncf %49 : vector<1x256xf32> to vector<1x256xbf16>
    %c0_33 = arith.constant 0 : index
    %c0_34 = arith.constant 0 : index
    %53 = vector.load %arg3[%c0_33, %c0_34] : memref<256x256xbf16, #tpu.memory_space<vmem>>, vector<256x256xbf16>
    %cst_35 = arith.constant dense<0.000000e+00> : vector<1x256xf32>
    %54 = tpu.matmul %52, %53, %cst_35 {dimension_numbers = #tpu.dot_dimension_numbers<[1], [0], [0], [1], [0, 0, 1, 1], [], []>} : vector<1x256xbf16>, vector<256x256xbf16>, vector<1x256xf32> -> vector<1x256xf32>
    %55 = arith.addf %51, %54 : vector<1x256xf32>
    %56 = math.tanh %55 : vector<1x256xf32>
    %c7_i32 = arith.constant 7 : i32
    %57 = arith.index_cast %c7_i32 : i32 to index
    %c0_36 = arith.constant 0 : index
    %58 = vector.load %arg8[%57, %c0_36] : memref<8x256xf32, #tpu.memory_space<vmem>>, vector<1x256xf32>
    %59 = arith.truncf %56 : vector<1x256xf32> to vector<1x256xbf16>
    %c0_37 = arith.constant 0 : index
    %c0_38 = arith.constant 0 : index
    %60 = vector.load %arg3[%c0_37, %c0_38] : memref<256x256xbf16, #tpu.memory_space<vmem>>, vector<256x256xbf16>
    %cst_39 = arith.constant dense<0.000000e+00> : vector<1x256xf32>
    %61 = tpu.matmul %59, %60, %cst_39 {dimension_numbers = #tpu.dot_dimension_numbers<[1], [0], [0], [1], [0, 0, 1, 1], [], []>} : vector<1x256xbf16>, vector<256x256xbf16>, vector<1x256xf32> -> vector<1x256xf32>
    %62 = arith.addf %58, %61 : vector<1x256xf32>
    %63 = math.tanh %62 : vector<1x256xf32>
    %c8_i32 = arith.constant 8 : i32
    %c0_40 = arith.constant 0 : index
    %c0_41 = arith.constant 0 : index
    %64 = vector.load %arg5[%c0_40, %c0_41] : memref<1x256xf32, #tpu.memory_space<vmem>>, vector<1x256xf32>
    %65 = arith.mulf %63, %64 : vector<1x256xf32>
    %cst_42 = arith.constant dense<0.000000e+00> : vector<1xf32>
    %66 = vector.multi_reduction <add>, %65, %cst_42 [1] : vector<1x256xf32> to vector<1xf32>
    %67 = vector.shape_cast %66 : vector<1xf32> to vector<1x1xf32>
    %c0_43 = arith.constant 0 : index
    %c0_44 = arith.constant 0 : index
    %68 = vector.load %arg6[%c0_43, %c0_44] : memref<1x1xf32, #tpu.memory_space<vmem>>, vector<1x1xf32>
    %69 = arith.addf %67, %68 : vector<1x1xf32>
    %c0_45 = arith.constant 0 : index
    %c0_46 = arith.constant 0 : index
    %70 = vector.load %arg7[%c0_45, %c0_46] : memref<1x1xf32, #tpu.memory_space<vmem>>, vector<1x1xf32>
    tpu.vector_store %arg7[%c0_45, %c0_46], %69 {strides = array<i32>} : memref<1x1xf32, #tpu.memory_space<vmem>>, vector<1x1xf32>,
    return
  }
  func.func @transform_0(%arg0: i32) -> (i32, i32) {
    %c0_i32 = arith.constant 0 : i32
    %c0_i32_0 = arith.constant 0 : i32
    %c0_i32_1 = arith.constant 0 : i32
    return %c0_i32, %c0_i32_0 : i32, i32
  }
  func.func @transform_1(%arg0: i32) -> (i32, i32) {
    %c0_i32 = arith.constant 0 : i32
    %c0_i32_0 = arith.constant 0 : i32
    %c0_i32_1 = arith.constant 0 : i32
    return %c0_i32, %c0_i32_0 : i32, i32
  }
  func.func @transform_2(%arg0: i32) -> (i32, i32) {
    %c0_i32 = arith.constant 0 : i32
    %c0_i32_0 = arith.constant 0 : i32
    %c0_i32_1 = arith.constant 0 : i32
    return %c0_i32, %c0_i32_0 : i32, i32
  }
  func.func @transform_3(%arg0: i32) -> (i32, i32) {
    %c0_i32 = arith.constant 0 : i32
    %c0_i32_0 = arith.constant 0 : i32
    %c0_i32_1 = arith.constant 0 : i32
    return %c0_i32, %c0_i32_0 : i32, i32
  }
  func.func @transform_4(%arg0: i32) -> (i32, i32) {
    %c0_i32 = arith.constant 0 : i32
    %c0_i32_0 = arith.constant 0 : i32
    %c0_i32_1 = arith.constant 0 : i32
    return %c0_i32, %c0_i32_0 : i32, i32
  }
  func.func @transform_5(%arg0: i32) -> (i32, i32) {
    %c0_i32 = arith.constant 0 : i32
    %c0_i32_0 = arith.constant 0 : i32
    %c0_i32_1 = arith.constant 0 : i32
    return %c0_i32, %c0_i32_0 : i32, i32
  }
  func.func @transform_6(%arg0: i32) -> (i32, i32) {
    %c0_i32 = arith.constant 0 : i32
    %c0_i32_0 = arith.constant 0 : i32
    %c0_i32_1 = arith.constant 0 : i32
    return %c0_i32, %c0_i32_0 : i32, i32
  }
}

</mosaic_0001>

<bundles_post_ra>
// kernel: simple_rnn_forward.1
= control target key start
LH: loop header
LB: loop body
LE: loop exit
PB: predicated region body
PF: predicated region fallthrough
CT: control target
= control target key end

     0   :  { %s1667_s0 = inlined_call_operand.vmem [shape: bf16[8,128], index: 0, kind: input, shape index: {}]   ;;  %s1668_s1 = inlined_call_operand.hbm [shape: bf16[128,256], index: 1, kind: input, shape index: {}]   ;;  %s1669_s2 = inlined_call_operand.hbm [shape: bf16[256,256], index: 2, kind: input, shape index: {}]   ;;  %s1670_s3 = inlined_call_operand.vmem [shape: f32[1,256], index: 3, kind: input, shape index: {}]   ;;  %s1671_s4 = inlined_call_operand.vmem [shape: f32[1,256], index: 4, kind: input, shape index: {}]   ;;  %s1672_s5 = inlined_call_operand.<no memory space> [shape: f32[1,1], index: 5, kind: input, shape index: {}]   ;;  %s1673_s6 = inlined_call_operand.hbm [shape: f32[1,1], index: 6, kind: output, shape index: {}]  }
   0x1   :  { %v11_v0 = vstv %s1672_s5 }
   0x2   :  { %12 = vst [vmem:[#allocation3] sm:$0x1] %v11_v0 }
   0x3   :  { %13 = vsyncpa [#allocation5], 0 }
   0x4   :  { %14 = vsyncpa [#allocation8], 0 }
   0x5   :  { %15 = vsyncpa [#allocation6], 0  ;;  %s1241_s23 = smov [#allocation4]  }
   0x6   :  { %s23_s24 = sshll.u32 %s1241_s23, 4  ;;  %s24_s24 = int_to_ptr.vmem [resolvable:$true] %s23_s24 }
   0x7   :  { %s1183_s25 = scalar_lea.vmem %s24_s24, 2048  ;;  %p1188_p1 = scmp.lt.s32.totalorder %s24_s24, %s24_s24 }
   0x8   :  { %p1184_p0 = scmp.ne.s32.totalorder %s24_s24, %s1183_s25  ;;  %p1189_p2 = scmp.lt.s32.totalorder %s1183_s25, %s1183_s25 }
   0xa   :  { %p1190_p3 = por %p1189_p2, %p1188_p1 }
   0xc   :  { %p1191_p4 = pnand %p1190_p3, %p1184_p0 }
   0xe   :  { %1194 = shalt.err (!%p1191_p4)
}
   0xf   :  { %s1242_s26 = smov 128   ;;  %s1243_s27 = smov 8  }
  0x10   :  { %29 = dma.hbm_to_vmem [thread:$0]  %s1668_s1, 2048, %s24_s24, [#allocation5], %s1242_s26, %s1242_s26, %s1243_s27  }
  0x11   :  { %s1244_s5 = smov [#allocation7]  }
  0x12   :  { %s35_s30 = sshll.u32 %s1244_s5, 4  ;;  %s36_s30 = int_to_ptr.vmem [resolvable:$true] %s35_s30 }
  0x13   :  { %s1203_s7 = scalar_lea.vmem %s36_s30, 4096  ;;  %p1208_p6 = scmp.lt.s32.totalorder %s36_s30, %s36_s30 }
  0x14   :  { %p1204_p5 = scmp.ne.s32.totalorder %s36_s30, %s1203_s7  ;;  %p1209_p7 = scmp.lt.s32.totalorder %s1203_s7, %s1203_s7 }
  0x16   :  { %p1210_p8 = por %p1209_p7, %p1208_p6 }
  0x18   :  { %p1211_p9 = pnand %p1210_p8, %p1204_p5 }
  0x1a   :  { %1214 = shalt.err (!%p1211_p9)
}
  0x1b   :  { %41 = dma.hbm_to_vmem [thread:$0]  %s1669_s2, 4096, %s36_s30, [#allocation8], %s1242_s26, %s1242_s26, %s1243_s27  }
  0x1c   :  { %1235 = dma.done.wait [#allocation5], 2048  }
  0x1d   :  { %1236 = vsyncadd [#allocation5], 4294965248 }
  0x1e   :  { %1237 = dma.done.wait [#allocation8], 4096  }
  0x1f   :  { %1238 = vsyncadd [#allocation8], 4294963200  ;;  %v1245_v1 = vmov 0   ;;  %v1294_v2 = vld [vmem:[#allocation7 + $0x74] ss:$8 sps:$4 sm:$0xff]   ;;  %v74_v51 = vlaneseq  ;;  %vm1006_vm0 = vcmask 1040384  }
  0x20   :  { %196 = vmatprep.mubr.bf16.mxu0 %v1245_v1  ;;  %432 = vmatprep.mubr.bf16.mxu1 %v1245_v1  ;;  %v1296_v3 = vld [vmem:[#allocation7 + $0x70] ss:$8 sps:$4 sm:$0xff]   ;;  %v1299_v4 = vld [vmem:[#allocation7 + $0x64] ss:$8 sps:$4 sm:$0xff]   ;;  %v1302_v5 = vld [vmem:[#allocation7 + $0x60] ss:$8 sps:$4 sm:$0xff]  }
  0x21   :  { %400 = vmatprep.subr.bf16.mxu1 %v1294_v2  ;;  %v1305_v6 = vld [vmem:[#allocation7 + $0x54] ss:$8 sps:$4 sm:$0xff]   ;;  %v1308_v7 = vld [vmem:[#allocation7 + $0x50] ss:$8 sps:$4 sm:$0xff]   ;;  %v1310_v8 = vld [vmem:[#allocation7 + $0x44] ss:$8 sps:$4 sm:$0xff]  }
  0x22   :  { %401 = vmatpush1.bf16.msra.mxu1 %v1296_v3  ;;  %v1105_v9 = vld [vmem:[#allocation4 + $0x74] ss:$8 sps:$4 sm:$0xff]   ;;  %v1107_v10 = vld [vmem:[#allocation4 + $0x70] ss:$8 sps:$4 sm:$0xff]   ;;  %v1313_v11 = vld [vmem:[#allocation7 + $0x40] ss:$8 sps:$4 sm:$0xff]  }
  0x23   :  { %402 = vmatprep.subr.bf16.mxu1 %v1299_v4  ;;  %164 = vmatprep.subr.bf16.mxu0 %v1105_v9  ;;  %v1111_v12 = vld [vmem:[#allocation4 + $0x64] ss:$8 sps:$4 sm:$0xff]   ;;  %v1113_v13 = vld [vmem:[#allocation4 + $0x60] ss:$8 sps:$4 sm:$0xff]   ;;  %v1317_v14 = vld [vmem:[#allocation7 + $0x34] ss:$8 sps:$4 sm:$0xff]  }
  0x24   :  { %165 = vmatpush1.bf16.msra.mxu0 %v1107_v10  ;;  %v1319_v15 = vld [vmem:[#allocation7 + $0x30] ss:$8 sps:$4 sm:$0xff]   ;;  %v1117_v16 = vld [vmem:[#allocation4 + $0x54] ss:$8 sps:$4 sm:$0xff]   ;;  %v1322_v17 = vld [vmem:[#allocation7 + $0x24] ss:$8 sps:$4 sm:$0xff]  }
  0x25   :  { %166 = vmatprep.subr.bf16.mxu0 %v1111_v12  ;;  %v1119_v18 = vld [vmem:[#allocation4 + $0x50] ss:$8 sps:$4 sm:$0xff]   ;;  %v1123_v19 = vld [vmem:[#allocation4 + $0x44] ss:$8 sps:$4 sm:$0xff]   ;;  %v1325_v20 = vld [vmem:[#allocation7 + $0x20] ss:$8 sps:$4 sm:$0xff]  }
  0x26   :  { %403 = vmatpush1.bf16.msra.mxu1 %v1302_v5  ;;  %v1328_v21 = vld [vmem:[#allocation7 + $0x14] ss:$8 sps:$4 sm:$0xff]   ;;  %v1125_v22 = vld [vmem:[#allocation4 + $0x40] ss:$8 sps:$4 sm:$0xff]   ;;  %v1331_v24 = vld [vmem:[#allocation7 + $0x10] ss:$8 sps:$4 sm:$0xff]  }
  0x27   :  { %404 = vmatprep.subr.bf16.mxu1 %v1305_v6  ;;  %v1129_v23 = vld [vmem:[#allocation4 + $0x34] ss:$8 sps:$4 sm:$0xff]   ;;  %v1334_v25 = vld [vmem:[#allocation7 + $0x4] ss:$8 sps:$4 sm:$0xff]   ;;  %v1131_v26 = vld [vmem:[#allocation4 + $0x30] ss:$8 sps:$4 sm:$0xff]  }
  0x28   :  { %167 = vmatpush1.bf16.msra.mxu0 %v1113_v13  ;;  %v1135_v27 = vld [vmem:[#allocation4 + $0x24] ss:$8 sps:$4 sm:$0xff]   ;;  %v1337_v28 = vld [vmem:[#allocation7] ss:$8 sps:$4 sm:$0xff]   ;;  %v1340_v29 = vld [vmem:[#allocation7 + $0xf4] ss:$8 sps:$4 sm:$0xff]  }
  0x29   :  { %168 = vmatprep.subr.bf16.mxu0 %v1117_v16  ;;  %v1137_v30 = vld [vmem:[#allocation4 + $0x20] ss:$8 sps:$4 sm:$0xff]   ;;  %v1141_v31 = vld [vmem:[#allocation4 + $0x14] ss:$8 sps:$4 sm:$0xff]   ;;  %v1343_v32 = vld [vmem:[#allocation7 + $0xf0] ss:$8 sps:$4 sm:$0xff]  }
  0x2a   :  { %405 = vmatpush1.bf16.msra.mxu1 %v1308_v7  ;;  %v1143_v33 = vld [vmem:[#allocation4 + $0x10] ss:$8 sps:$4 sm:$0xff]   ;;  %v1347_v34 = vld [vmem:[#allocation7 + $0xe4] ss:$8 sps:$4 sm:$0xff]   ;;  %v1350_v36 = vld [vmem:[#allocation7 + $0xe0] ss:$8 sps:$4 sm:$0xff]  }
  0x2b   :  { %406 = vmatprep.subr.bf16.mxu1 %v1310_v8  ;;  %v1147_v35 = vld [vmem:[#allocation4 + $0x4] ss:$8 sps:$4 sm:$0xff]   ;;  %v1149_v37 = vld [vmem:[#allocation4] ss:$8 sps:$4 sm:$0xff]   ;;  %v1353_v38 = vld [vmem:[#allocation7 + $0xd4] ss:$8 sps:$4 sm:$0xff]  }
  0x2c   :  { %169 = vmatpush1.bf16.msra.mxu0 %v1119_v18  ;;  %v1356_v39 = vld [vmem:[#allocation7 + $0xd0] ss:$8 sps:$4 sm:$0xff]   ;;  %v1362_v41 = vld [vmem:[#allocation7 + $0xc4] ss:$8 sps:$4 sm:$0xff]   ;;  %v1366_v42 = vld [vmem:[#allocation7 + $0xc0] ss:$8 sps:$4 sm:$0xff]  }
  0x2d   :  { %170 = vmatprep.subr.bf16.mxu0 %v1123_v19  ;;  %v55_v40 = vld [vmem:[%s1667_s0] sm:$0xf]  ;;  %v1370_v43 = vld [vmem:[#allocation7 + $0xb4] ss:$8 sps:$4 sm:$0xff]   ;;  %v1382_v46 = vld [vmem:[#allocation7 + $0xa0] ss:$8 sps:$4 sm:$0xff]  }
  0x2e   :  { %407 = vmatpush1.bf16.msra.mxu1 %v1313_v11  ;;  %v1374_v44 = vld [vmem:[#allocation7 + $0xb0] ss:$8 sps:$4 sm:$0xff]   ;;  %v1378_v45 = vld [vmem:[#allocation7 + $0xa4] ss:$8 sps:$4 sm:$0xff]   ;;  %v1386_v47 = vld [vmem:[#allocation7 + $0x94] ss:$8 sps:$4 sm:$0xff]  }
  0x2f   :  { %408 = vmatprep.subr.bf16.mxu1 %v1317_v14  ;;  %v1390_v48 = vld [vmem:[#allocation7 + $0x90] ss:$8 sps:$4 sm:$0xff]   ;;  %v1394_v49 = vld [vmem:[#allocation7 + $0x84] ss:$8 sps:$4 sm:$0xff]   ;;  %v1398_v50 = vld [vmem:[#allocation7 + $0x80] ss:$8 sps:$4 sm:$0xff]  }
  0x30   :  { %171 = vmatpush1.bf16.msra.mxu0 %v1125_v22  ;;  %v75_v52 = vshrl.u32 %v74_v51, 7  ;;  %v72_v54 = vld [vmem:[%s1670_s3] sm:$0x3]  ;;  %v1246_v0 = vmov 1966171168   ;;  %s1247_s12 = smov [#allocation9]  }
  0x31   :  { %172 = vmatprep.subr.bf16.mxu0 %v1129_v23  ;;  %s1022_s13 = sshll.u32 %s1247_s12, 4  ;;  %vm1014_vm1 = vcmask 0   ;;  %s1023_s13 = int_to_ptr.vmem [resolvable:$true] %s1022_s13 }
  0x32   :  { %409 = vmatpush1.bf16.msra.mxu1 %v1319_v15  ;;  %v1460_v53 = vsub.s32 0, %v75_v52  ;;  %v1465_v55 = vsub.s32 1, %v75_v52  ;;  %s1219_s14 = scalar_lea.vmem %s1023_s13, 32  ;;  %p1220_p11 = scmp.lt.s32.totalorder %s1023_s13, %s1023_s13 }
  0x33   :  { %410 = vmatprep.subr.bf16.mxu1 %v1322_v17 }
  0x34   :  { %173 = vmatpush1.bf16.msra.mxu0 %v1131_v26  ;;  %v77_v56 = vrot.slane %v72_v54, %v1460_v53  ;;  %v81_v57 = vrot.slane %v72_v54, %v1465_v55 }
  0x35   :  { %174 = vmatprep.subr.bf16.mxu0 %v1135_v27 }
  0x36   :  { %411 = vmatpush1.bf16.msra.mxu1 %v1325_v20 }
  0x37   :  { %412 = vmatprep.subr.bf16.mxu1 %v1328_v21 }
  0x38   :  { %175 = vmatpush1.bf16.msra.mxu0 %v1137_v30 }
  0x39   :  { %176 = vmatprep.subr.bf16.mxu0 %v1141_v31 }
  0x3a   :  { %413 = vmatpush1.bf16.msra.mxu1 %v1331_v24 }
  0x3b   :  { %414 = vmatprep.subr.bf16.mxu1 %v1334_v25 }
  0x3c   :  { %177 = vmatpush1.bf16.msra.mxu0 %v1143_v33 }
  0x3d   :  { %178 = vmatprep.subr.bf16.mxu0 %v1147_v35 }
  0x3e   :  { %415 = vmatpush1.bf16.msra.mxu1 %v1337_v28 }
  0x3f   :  { %416 = vmatprep.subr.bf16.mxu1 %v1340_v29 }
  0x40   :  { %179 = vmatpush1.bf16.msra.mxu0 %v1149_v37 }
  0x41   :  { %476 = vmatprep.subr.bf16.mxu0 %v1294_v2 }
  0x42   :  { %417 = vmatpush2.bf16.msra.mxu1 %v1343_v32 }
  0x43   :  { %418 = vmatprep.subr.bf16.mxu1 %v1347_v34  ;;  %197 = vmatmul.mubr.bf16.vlgmr.msra.gmra.mxu0 %v55_v40 }
  0x44   :  { %477 = vmatpush1.bf16.msra.mxu0 %v1296_v3 }
  0x45   :  { %478 = vmatprep.subr.bf16.mxu0 %v1299_v4 }
  0x46   :  { %419 = vmatpush2.bf16.msra.mxu1 %v1350_v36 }
  0x47   :  { %420 = vmatprep.subr.bf16.mxu1 %v1353_v38 }
  0x48   :  { %479 = vmatpush1.bf16.msra.mxu0 %v1302_v5 }
  0x49   :  { %480 = vmatprep.subr.bf16.mxu0 %v1305_v6 }
  0x4a   :  { %421 = vmatpush2.bf16.msra.mxu1 %v1356_v39 }
  0x4b   :  { %422 = vmatprep.subr.bf16.mxu1 %v1362_v41 }
  0x4c   :  { %481 = vmatpush1.bf16.msra.mxu0 %v1308_v7 }
  0x4d   :  { %482 = vmatprep.subr.bf16.mxu0 %v1310_v8 }
  0x4e   :  { %423 = vmatpush2.bf16.msra.mxu1 %v1366_v42 }
  0x4f   :  { %424 = vmatprep.subr.bf16.mxu1 %v1370_v43 }
  0x50   :  { %483 = vmatpush1.bf16.msra.mxu0 %v1313_v11 }
  0x51   :  { %484 = vmatprep.subr.bf16.mxu0 %v1317_v14 }
  0x52   :  { %425 = vmatpush2.bf16.msra.mxu1 %v1374_v44 }
  0x53   :  { %426 = vmatprep.subr.bf16.mxu1 %v1378_v45 }
  0x54   :  { %485 = vmatpush1.bf16.msra.mxu0 %v1319_v15 }
  0x55   :  { %486 = vmatprep.subr.bf16.mxu0 %v1322_v17 }
  0x56   :  { %427 = vmatpush2.bf16.msra.mxu1 %v1382_v46 }
  0x57   :  { %428 = vmatprep.subr.bf16.mxu1 %v1386_v47 }
  0x58   :  { %487 = vmatpush1.bf16.msra.mxu0 %v1325_v20 }
  0x59   :  { %488 = vmatprep.subr.bf16.mxu0 %v1328_v21 }
  0x5a   :  { %429 = vmatpush2.bf16.msra.mxu1 %v1390_v48 }
  0x5b   :  { %430 = vmatprep.subr.bf16.mxu1 %v1394_v49 }
  0x5c   :  { %489 = vmatpush1.bf16.msra.mxu0 %v1331_v24 }
  0x5d   :  { %490 = vmatprep.subr.bf16.mxu0 %v1334_v25 }
  0x5e   :  { %431 = vmatpush2.bf16.msra.mxu1 %v1398_v50 }
  0x5f   :  { %552 = vmatprep.subr.bf16.mxu1 %v1294_v2 }
  0x60   :  { %491 = vmatpush1.bf16.msra.mxu0 %v1337_v28 }
  0x61   :  { %433 = vmatmul.mubr.bf16.vlgmr.msra.gmra.mxu1 %v1245_v1  ;;  %492 = vmatprep.subr.bf16.mxu0 %v1340_v29  ;;  %v445_v1 = vunpack.c.l.s4 %v1246_v0 }
  0x62   :  { %553 = vmatpush1.bf16.msra.mxu1 %v1296_v3 }
  0x63   :  { %554 = vmatprep.subr.bf16.mxu1 %v1299_v4  ;;  %v446_v9 = vunpack.c.0.s8 %v445_v1 }
  0x64   :  { %493 = vmatpush2.bf16.msra.mxu0 %v1343_v32 }
  0x65   :  { %494 = vmatprep.subr.bf16.mxu0 %v1347_v34  ;;  %v1469_v12 = vsub.s32 %v446_v9, %v75_v52 }
  0x66   :  { %555 = vmatpush1.bf16.msra.mxu1 %v1302_v5 }
  0x67   :  { %556 = vmatprep.subr.bf16.mxu1 %v1305_v6 }
  0x68   :  { %495 = vmatpush2.bf16.msra.mxu0 %v1350_v36 }
  0x69   :  { %496 = vmatprep.subr.bf16.mxu0 %v1353_v38 }
  0x6a   :  { %557 = vmatpush1.bf16.msra.mxu1 %v1308_v7 }
  0x6b   :  { %558 = vmatprep.subr.bf16.mxu1 %v1310_v8 }
  0x6c   :  { %497 = vmatpush2.bf16.msra.mxu0 %v1356_v39 }
  0x6d   :  { %498 = vmatprep.subr.bf16.mxu0 %v1362_v41 }
  0x6e   :  { %559 = vmatpush1.bf16.msra.mxu1 %v1313_v11 }
  0x6f   :  { %560 = vmatprep.subr.bf16.mxu1 %v1317_v14 }
  0x70   :  { %499 = vmatpush2.bf16.msra.mxu0 %v1366_v42 }
  0x71   :  { %500 = vmatprep.subr.bf16.mxu0 %v1370_v43 }
  0x72   :  { %561 = vmatpush1.bf16.msra.mxu1 %v1319_v15 }
  0x73   :  { %562 = vmatprep.subr.bf16.mxu1 %v1322_v17 }
  0x74   :  { %501 = vmatpush2.bf16.msra.mxu0 %v1374_v44 }
  0x75   :  { %502 = vmatprep.subr.bf16.mxu0 %v1378_v45 }
  0x76   :  { %563 = vmatpush1.bf16.msra.mxu1 %v1325_v20 }
  0x77   :  { %564 = vmatprep.subr.bf16.mxu1 %v1328_v21 }
  0x78   :  { %503 = vmatpush2.bf16.msra.mxu0 %v1382_v46 }
  0x79   :  { %504 = vmatprep.subr.bf16.mxu0 %v1386_v47 }
  0x7a   :  { %565 = vmatpush1.bf16.msra.mxu1 %v1331_v24 }
  0x7b   :  { %566 = vmatprep.subr.bf16.mxu1 %v1334_v25 }
  0x7c   :  { %505 = vmatpush2.bf16.msra.mxu0 %v1390_v48 }
  0x7d   :  { %506 = vmatprep.subr.bf16.mxu0 %v1394_v49 }
  0x7e   :  { %567 = vmatpush1.bf16.msra.mxu1 %v1337_v28 }
  0x7f   :  { %568 = vmatprep.subr.bf16.mxu1 %v1340_v29 }
  0x80   :  { %507 = vmatpush2.bf16.msra.mxu0 %v1398_v50 }
  0x81   :  { %628 = vmatprep.subr.bf16.mxu0 %v1294_v2 }
  0x82   :  { %569 = vmatpush2.bf16.msra.mxu1 %v1343_v32 }
  0x83   :  { %570 = vmatprep.subr.bf16.mxu1 %v1347_v34 }
  0x86   :  { %571 = vmatpush2.bf16.msra.mxu1 %v1350_v36 }
  0x87   :  { %572 = vmatprep.subr.bf16.mxu1 %v1353_v38 }
  0x8a   :  { %573 = vmatpush2.bf16.msra.mxu1 %v1356_v39 }
  0x8b   :  { %574 = vmatprep.subr.bf16.mxu1 %v1362_v41 }
  0x8e   :  { %575 = vmatpush2.bf16.msra.mxu1 %v1366_v42 }
  0x8f   :  { %576 = vmatprep.subr.bf16.mxu1 %v1370_v43 }
  0x92   :  { %577 = vmatpush2.bf16.msra.mxu1 %v1374_v44 }
  0x93   :  { %578 = vmatprep.subr.bf16.mxu1 %v1378_v45 }
  0x96   :  { %579 = vmatpush2.bf16.msra.mxu1 %v1382_v46 }
  0x97   :  { %580 = vmatprep.subr.bf16.mxu1 %v1386_v47 }
  0x9a   :  { %581 = vmatpush2.bf16.msra.mxu1 %v1390_v48 }
  0x9b   :  { %582 = vmatprep.subr.bf16.mxu1 %v1394_v49 }
  0x9e   :  { %583 = vmatpush2.bf16.msra.mxu1 %v1398_v50 }
  0x9f   :  { %704 = vmatprep.subr.bf16.mxu1 %v1294_v2 }
 0x103   :  { %v198_v58 = vpop.f32.mrf.mxu0 }
 0x104   :  { %v199_v59 = vadd.f32 %v198_v58, %v77_v56 }
 0x105   :  { %v200_v60 = vpop.f32.mrf.mxu0 }
 0x106   :  { %205 = vst [vmem:[#allocation2] sm:$0xff] %v199_v59  ;;  %v201_v61 = vadd.f32 %v200_v60, %v81_v57 }
 0x107   :  { %v202_v62 = vpop.f32.mrf.mxu0 }
 0x108   :  { %206 = vst [vmem:[#allocation2 + $0x8] sm:$0xff] %v201_v61 }
 0x109   :  { %v203_v63 = vpop.f32.mrf.mxu0 }
 0x10f   :  { %v207_v26 = vld [vmem:[#allocation2] ss:$8 sm:$0x3]  ;;  %v462_v59 = vld [vmem:[#allocation2 + $0x1] ss:$8 sm:$0x3] }
 0x121   :  { %v434_v10 = vpop.f32.mrf.mxu1 }
 0x123   :  { %v436_v13 = vpop.f32.mrf.mxu1 }
 0x124   :  { %v443_v16 = vcombine.low %v434_v10, %v436_v13 }
 0x125   :  { %v438_v18 = vpop.f32.mrf.mxu1 }
 0x126   :  { %v450_v19 = vrot.slane %v443_v16, %v1469_v12 }
 0x127   :  { %v439_v22 = vpop.f32.mrf.mxu1 }
 0x128   :  { %v457_v23 = vrot.slane %v450_v19, %v1469_v12 }
 0x12a   :  { %v459_v27 = vadd.f32 %v457_v23, %v207_v26  ;;  %v538_v23 = vld [vmem:[#allocation2 + $0x2] ss:$8 sm:$0x3] }
 0x12c   :  { %1159 = vtanh.f32 %v459_v27 }
 0x139   :  { %v1160_v30 = vpop.eup %1159 }
 0x13a   :  { %v471_v31 = vrot.slane %v1160_v30, %v1465_v55  ;;  %v467_v33 = vrot.slane %v1160_v30, %v1460_v53 }
 0x13c   :  { %v475_v35 = vpack.c.bf16 %v471_v31, %v471_v31  ;;  %v474_v37 = vpack.c.bf16 %v467_v33, %v467_v33 }
 0x13e   :  { %508 = vmatprep.mubr.bf16.mxu0 %v475_v35 }
 0x13f   :  { %509 = vmatmul.mubr.bf16.vlgmr.msra.gmra.mxu0 %v474_v37 }
 0x140   :  { %629 = vmatpush1.bf16.msra.mxu0 %v1296_v3 }
 0x141   :  { %630 = vmatprep.subr.bf16.mxu0 %v1299_v4 }
 0x144   :  { %631 = vmatpush1.bf16.msra.mxu0 %v1302_v5 }
 0x145   :  { %632 = vmatprep.subr.bf16.mxu0 %v1305_v6 }
 0x148   :  { %633 = vmatpush1.bf16.msra.mxu0 %v1308_v7 }
 0x149   :  { %634 = vmatprep.subr.bf16.mxu0 %v1310_v8 }
 0x14c   :  { %635 = vmatpush1.bf16.msra.mxu0 %v1313_v11 }
 0x14d   :  { %636 = vmatprep.subr.bf16.mxu0 %v1317_v14 }
 0x150   :  { %637 = vmatpush1.bf16.msra.mxu0 %v1319_v15 }
 0x151   :  { %638 = vmatprep.subr.bf16.mxu0 %v1322_v17 }
 0x154   :  { %639 = vmatpush1.bf16.msra.mxu0 %v1325_v20 }
 0x155   :  { %640 = vmatprep.subr.bf16.mxu0 %v1328_v21 }
 0x158   :  { %641 = vmatpush1.bf16.msra.mxu0 %v1331_v24 }
 0x159   :  { %642 = vmatprep.subr.bf16.mxu0 %v1334_v25 }
 0x15c   :  { %643 = vmatpush1.bf16.msra.mxu0 %v1337_v28 }
 0x15d   :  { %644 = vmatprep.subr.bf16.mxu0 %v1340_v29 }
 0x160   :  { %645 = vmatpush2.bf16.msra.mxu0 %v1343_v32 }
 0x161   :  { %646 = vmatprep.subr.bf16.mxu0 %v1347_v34 }
 0x164   :  { %647 = vmatpush2.bf16.msra.mxu0 %v1350_v36 }
 0x165   :  { %648 = vmatprep.subr.bf16.mxu0 %v1353_v38 }
 0x168   :  { %649 = vmatpush2.bf16.msra.mxu0 %v1356_v39 }
 0x169   :  { %650 = vmatprep.subr.bf16.mxu0 %v1362_v41 }
 0x16c   :  { %651 = vmatpush2.bf16.msra.mxu0 %v1366_v42 }
 0x16d   :  { %652 = vmatprep.subr.bf16.mxu0 %v1370_v43 }
 0x170   :  { %653 = vmatpush2.bf16.msra.mxu0 %v1374_v44 }
 0x171   :  { %654 = vmatprep.subr.bf16.mxu0 %v1378_v45 }
 0x174   :  { %655 = vmatpush2.bf16.msra.mxu0 %v1382_v46 }
 0x175   :  { %656 = vmatprep.subr.bf16.mxu0 %v1386_v47 }
 0x178   :  { %657 = vmatpush2.bf16.msra.mxu0 %v1390_v48 }
 0x179   :  { %658 = vmatprep.subr.bf16.mxu0 %v1394_v49 }
 0x17c   :  { %659 = vmatpush2.bf16.msra.mxu0 %v1398_v50 }
 0x17d   :  { %780 = vmatprep.subr.bf16.mxu0 %v1294_v2 }
 0x1ff   :  { %v510_v40 = vpop.f32.mrf.mxu0 }
 0x201   :  { %v512_v51 = vpop.f32.mrf.mxu0 }
 0x202   :  { %v519_v52 = vcombine.low %v510_v40, %v512_v51 }
 0x203   :  { %v514_v54 = vpop.f32.mrf.mxu0 }
 0x204   :  { %v526_v56 = vrot.slane %v519_v52, %v1469_v12 }
 0x205   :  { %v515_v57 = vpop.f32.mrf.mxu0 }
 0x206   :  { %v533_v58 = vrot.slane %v526_v56, %v1469_v12 }
 0x208   :  { %v535_v60 = vadd.f32 %v533_v58, %v462_v59  ;;  %v614_v58 = vld [vmem:[#allocation2 + $0x3] ss:$8 sm:$0x3] }
 0x20a   :  { %1161 = vtanh.f32 %v535_v60 }
 0x217   :  { %v1162_v61 = vpop.eup %1161 }
 0x218   :  { %v547_v62 = vrot.slane %v1162_v61, %v1465_v55  ;;  %v543_v63 = vrot.slane %v1162_v61, %v1460_v53 }
 0x21a   :  { %v551_v0 = vpack.c.bf16 %v547_v62, %v547_v62  ;;  %v550_v1 = vpack.c.bf16 %v543_v63, %v543_v63 }
 0x21c   :  { %584 = vmatprep.mubr.bf16.mxu1 %v551_v0 }
 0x21d   :  { %585 = vmatmul.mubr.bf16.vlgmr.msra.gmra.mxu1 %v550_v1 }
 0x21e   :  { %705 = vmatpush1.bf16.msra.mxu1 %v1296_v3 }
 0x21f   :  { %706 = vmatprep.subr.bf16.mxu1 %v1299_v4 }
 0x222   :  { %707 = vmatpush1.bf16.msra.mxu1 %v1302_v5 }
 0x223   :  { %708 = vmatprep.subr.bf16.mxu1 %v1305_v6 }
 0x226   :  { %709 = vmatpush1.bf16.msra.mxu1 %v1308_v7 }
 0x227   :  { %710 = vmatprep.subr.bf16.mxu1 %v1310_v8 }
 0x22a   :  { %711 = vmatpush1.bf16.msra.mxu1 %v1313_v11 }
 0x22b   :  { %712 = vmatprep.subr.bf16.mxu1 %v1317_v14 }
 0x22e   :  { %713 = vmatpush1.bf16.msra.mxu1 %v1319_v15 }
 0x22f   :  { %714 = vmatprep.subr.bf16.mxu1 %v1322_v17 }
 0x232   :  { %715 = vmatpush1.bf16.msra.mxu1 %v1325_v20 }
 0x233   :  { %716 = vmatprep.subr.bf16.mxu1 %v1328_v21 }
 0x236   :  { %717 = vmatpush1.bf16.msra.mxu1 %v1331_v24 }
 0x237   :  { %718 = vmatprep.subr.bf16.mxu1 %v1334_v25 }
 0x23a   :  { %719 = vmatpush1.bf16.msra.mxu1 %v1337_v28 }
 0x23b   :  { %720 = vmatprep.subr.bf16.mxu1 %v1340_v29 }
 0x23e   :  { %721 = vmatpush2.bf16.msra.mxu1 %v1343_v32 }
 0x23f   :  { %722 = vmatprep.subr.bf16.mxu1 %v1347_v34 }
 0x242   :  { %723 = vmatpush2.bf16.msra.mxu1 %v1350_v36 }
 0x243   :  { %724 = vmatprep.subr.bf16.mxu1 %v1353_v38 }
 0x246   :  { %725 = vmatpush2.bf16.msra.mxu1 %v1356_v39 }
 0x247   :  { %726 = vmatprep.subr.bf16.mxu1 %v1362_v41 }
 0x24a   :  { %727 = vmatpush2.bf16.msra.mxu1 %v1366_v42 }
 0x24b   :  { %728 = vmatprep.subr.bf16.mxu1 %v1370_v43 }
 0x24e   :  { %729 = vmatpush2.bf16.msra.mxu1 %v1374_v44 }
 0x24f   :  { %730 = vmatprep.subr.bf16.mxu1 %v1378_v45 }
 0x252   :  { %731 = vmatpush2.bf16.msra.mxu1 %v1382_v46 }
 0x253   :  { %732 = vmatprep.subr.bf16.mxu1 %v1386_v47 }
 0x256   :  { %733 = vmatpush2.bf16.msra.mxu1 %v1390_v48 }
 0x257   :  { %734 = vmatprep.subr.bf16.mxu1 %v1394_v49 }
 0x25a   :  { %735 = vmatpush2.bf16.msra.mxu1 %v1398_v50 }
 0x25b   :  { %856 = vmatprep.subr.bf16.mxu1 %v1294_v2 }
 0x2dd   :  { %v586_v9 = vpop.f32.mrf.mxu1 }
 0x2df   :  { %v588_v10 = vpop.f32.mrf.mxu1 }
 0x2e0   :  { %v595_v13 = vcombine.low %v586_v9, %v588_v10 }
 0x2e1   :  { %v590_v16 = vpop.f32.mrf.mxu1 }
 0x2e2   :  { %v602_v18 = vrot.slane %v595_v13, %v1469_v12 }
 0x2e3   :  { %v591_v19 = vpop.f32.mrf.mxu1 }
 0x2e4   :  { %v609_v22 = vrot.slane %v602_v18, %v1469_v12  ;;  %v690_v19 = vld [vmem:[#allocation2 + $0x4] ss:$8 sm:$0x3] }
 0x2e6   :  { %v611_v26 = vadd.f32 %v609_v22, %v538_v23 }
 0x2e8   :  { %1163 = vtanh.f32 %v611_v26 }
 0x2f5   :  { %v1164_v27 = vpop.eup %1163 }
 0x2f6   :  { %v623_v30 = vrot.slane %v1164_v27, %v1465_v55  ;;  %v619_v31 = vrot.slane %v1164_v27, %v1460_v53 }
 0x2f8   :  { %v627_v33 = vpack.c.bf16 %v623_v30, %v623_v30  ;;  %v626_v35 = vpack.c.bf16 %v619_v31, %v619_v31 }
 0x2fa   :  { %660 = vmatprep.mubr.bf16.mxu0 %v627_v33 }
 0x2fb   :  { %661 = vmatmul.mubr.bf16.vlgmr.msra.gmra.mxu0 %v626_v35 }
 0x2fc   :  { %781 = vmatpush1.bf16.msra.mxu0 %v1296_v3 }
 0x2fd   :  { %782 = vmatprep.subr.bf16.mxu0 %v1299_v4 }
 0x300   :  { %783 = vmatpush1.bf16.msra.mxu0 %v1302_v5 }
 0x301   :  { %784 = vmatprep.subr.bf16.mxu0 %v1305_v6 }
 0x304   :  { %785 = vmatpush1.bf16.msra.mxu0 %v1308_v7 }
 0x305   :  { %786 = vmatprep.subr.bf16.mxu0 %v1310_v8 }
 0x308   :  { %787 = vmatpush1.bf16.msra.mxu0 %v1313_v11 }
 0x309   :  { %788 = vmatprep.subr.bf16.mxu0 %v1317_v14 }
 0x30c   :  { %789 = vmatpush1.bf16.msra.mxu0 %v1319_v15 }
 0x30d   :  { %790 = vmatprep.subr.bf16.mxu0 %v1322_v17 }
 0x310   :  { %791 = vmatpush1.bf16.msra.mxu0 %v1325_v20 }
 0x311   :  { %792 = vmatprep.subr.bf16.mxu0 %v1328_v21 }
 0x314   :  { %793 = vmatpush1.bf16.msra.mxu0 %v1331_v24 }
 0x315   :  { %794 = vmatprep.subr.bf16.mxu0 %v1334_v25 }
 0x318   :  { %795 = vmatpush1.bf16.msra.mxu0 %v1337_v28 }
 0x319   :  { %796 = vmatprep.subr.bf16.mxu0 %v1340_v29 }
 0x31c   :  { %797 = vmatpush2.bf16.msra.mxu0 %v1343_v32 }
 0x31d   :  { %798 = vmatprep.subr.bf16.mxu0 %v1347_v34 }
 0x320   :  { %799 = vmatpush2.bf16.msra.mxu0 %v1350_v36 }
 0x321   :  { %800 = vmatprep.subr.bf16.mxu0 %v1353_v38 }
 0x324   :  { %801 = vmatpush2.bf16.msra.mxu0 %v1356_v39 }
 0x325   :  { %802 = vmatprep.subr.bf16.mxu0 %v1362_v41 }
 0x328   :  { %803 = vmatpush2.bf16.msra.mxu0 %v1366_v42 }
 0x329   :  { %804 = vmatprep.subr.bf16.mxu0 %v1370_v43 }
 0x32c   :  { %805 = vmatpush2.bf16.msra.mxu0 %v1374_v44 }
 0x32d   :  { %806 = vmatprep.subr.bf16.mxu0 %v1378_v45 }
 0x330   :  { %807 = vmatpush2.bf16.msra.mxu0 %v1382_v46 }
 0x331   :  { %808 = vmatprep.subr.bf16.mxu0 %v1386_v47 }
 0x334   :  { %809 = vmatpush2.bf16.msra.mxu0 %v1390_v48 }
 0x335   :  { %810 = vmatprep.subr.bf16.mxu0 %v1394_v49 }
 0x338   :  { %811 = vmatpush2.bf16.msra.mxu0 %v1398_v50 }
 0x339   :  { %932 = vmatprep.subr.bf16.mxu0 %v1294_v2 }
 0x3bb   :  { %v662_v37 = vpop.f32.mrf.mxu0 }
 0x3bd   :  { %v664_v40 = vpop.f32.mrf.mxu0 }
 0x3be   :  { %v671_v51 = vcombine.low %v662_v37, %v664_v40 }
 0x3bf   :  { %v666_v52 = vpop.f32.mrf.mxu0 }
 0x3c0   :  { %v678_v54 = vrot.slane %v671_v51, %v1469_v12  ;;  %v918_v51 = vld [vmem:[#allocation2 + $0x7] ss:$8 sm:$0x3] }
 0x3c1   :  { %v667_v56 = vpop.f32.mrf.mxu0 }
 0x3c2   :  { %v685_v57 = vrot.slane %v678_v54, %v1469_v12  ;;  %v993_v54 = vld [vmem:[%s1671_s4] sm:$0x3]  ;;  %s1215_s4 = scalar_lea.vmem %s1023_s13, 16 }
 0x3c3   :  { %p1216_p10 = scmp.ne.s32.totalorder %s1023_s13, %s1215_s4  ;;  %p1221_p12 = scmp.lt.s32.totalorder %s1219_s14, %s1215_s4 }
 0x3c4   :  { %v687_v59 = vadd.f32 %v685_v57, %v614_v58 }
 0x3c5   :  { %p1222_p13 = por %p1221_p12, %p1220_p11 }
 0x3c6   :  { %1165 = vtanh.f32 %v687_v59 }
 0x3c7   :  { %p1223_p0 = pnand %p1222_p13, %p1216_p10 }
 0x3d3   :  { %v1166_v60 = vpop.eup %1165 }
 0x3d4   :  { %v699_v61 = vrot.slane %v1166_v60, %v1465_v55  ;;  %v695_v62 = vrot.slane %v1166_v60, %v1460_v53 }
 0x3d6   :  { %v703_v63 = vpack.c.bf16 %v699_v61, %v699_v61  ;;  %v702_v0 = vpack.c.bf16 %v695_v62, %v695_v62 }
 0x3d8   :  { %736 = vmatprep.mubr.bf16.mxu1 %v703_v63  ;;  %v1012_v63 = vld [vmem:[#allocation3] sm:$0x1] }
 0x3d9   :  { %737 = vmatmul.mubr.bf16.vlgmr.msra.gmra.mxu1 %v702_v0 }
 0x3da   :  { %857 = vmatpush1.bf16.msra.mxu1 %v1296_v3 }
 0x3db   :  { %858 = vmatprep.subr.bf16.mxu1 %v1299_v4 }
 0x3de   :  { %859 = vmatpush1.bf16.msra.mxu1 %v1302_v5 }
 0x3df   :  { %860 = vmatprep.subr.bf16.mxu1 %v1305_v6 }
 0x3e2   :  { %861 = vmatpush1.bf16.msra.mxu1 %v1308_v7 }
 0x3e3   :  { %862 = vmatprep.subr.bf16.mxu1 %v1310_v8 }
 0x3e6   :  { %863 = vmatpush1.bf16.msra.mxu1 %v1313_v11 }
 0x3e7   :  { %864 = vmatprep.subr.bf16.mxu1 %v1317_v14 }
 0x3ea   :  { %865 = vmatpush1.bf16.msra.mxu1 %v1319_v15 }
 0x3eb   :  { %866 = vmatprep.subr.bf16.mxu1 %v1322_v17 }
 0x3ee   :  { %867 = vmatpush1.bf16.msra.mxu1 %v1325_v20 }
 0x3ef   :  { %868 = vmatprep.subr.bf16.mxu1 %v1328_v21 }
 0x3f2   :  { %869 = vmatpush1.bf16.msra.mxu1 %v1331_v24 }
 0x3f3   :  { %870 = vmatprep.subr.bf16.mxu1 %v1334_v25 }
 0x3f6   :  { %871 = vmatpush1.bf16.msra.mxu1 %v1337_v28 }
 0x3f7   :  { %872 = vmatprep.subr.bf16.mxu1 %v1340_v29 }
 0x3fa   :  { %873 = vmatpush2.bf16.msra.mxu1 %v1343_v32 }
 0x3fb   :  { %874 = vmatprep.subr.bf16.mxu1 %v1347_v34 }
 0x3fe   :  { %875 = vmatpush2.bf16.msra.mxu1 %v1350_v36 }
 0x3ff   :  { %876 = vmatprep.subr.bf16.mxu1 %v1353_v38 }
 0x402   :  { %877 = vmatpush2.bf16.msra.mxu1 %v1356_v39 }
 0x403   :  { %878 = vmatprep.subr.bf16.mxu1 %v1362_v41 }
 0x406   :  { %879 = vmatpush2.bf16.msra.mxu1 %v1366_v42 }
 0x407   :  { %880 = vmatprep.subr.bf16.mxu1 %v1370_v43 }
 0x40a   :  { %881 = vmatpush2.bf16.msra.mxu1 %v1374_v44 }
 0x40b   :  { %882 = vmatprep.subr.bf16.mxu1 %v1378_v45 }
 0x40e   :  { %883 = vmatpush2.bf16.msra.mxu1 %v1382_v46 }
 0x40f   :  { %884 = vmatprep.subr.bf16.mxu1 %v1386_v47 }
 0x412   :  { %885 = vmatpush2.bf16.msra.mxu1 %v1390_v48 }
 0x413   :  { %886 = vmatprep.subr.bf16.mxu1 %v1394_v49 }
 0x416   :  { %887 = vmatpush2.bf16.msra.mxu1 %v1398_v50 }
 0x499   :  { %v738_v2 = vpop.f32.mrf.mxu1 }
 0x49b   :  { %v740_v1 = vpop.f32.mrf.mxu1 }
 0x49c   :  { %v747_v9 = vcombine.low %v738_v2, %v740_v1 }
 0x49d   :  { %v742_v10 = vpop.f32.mrf.mxu1 }
 0x49e   :  { %v754_v13 = vrot.slane %v747_v9, %v1469_v12 }
 0x49f   :  { %v743_v16 = vpop.f32.mrf.mxu1 }
 0x4a0   :  { %v761_v18 = vrot.slane %v754_v13, %v1469_v12 }
 0x4a2   :  { %v763_v22 = vadd.f32 %v761_v18, %v690_v19 }
 0x4a4   :  { %1167 = vtanh.f32 %v763_v22 }
 0x4b1   :  { %v1168_v23 = vpop.eup %1167 }
 0x4b2   :  { %v775_v26 = vrot.slane %v1168_v23, %v1465_v55  ;;  %v771_v27 = vrot.slane %v1168_v23, %v1460_v53 }
 0x4b4   :  { %v779_v30 = vpack.c.bf16 %v775_v26, %v775_v26  ;;  %v778_v31 = vpack.c.bf16 %v771_v27, %v771_v27 }
 0x4b6   :  { %812 = vmatprep.mubr.bf16.mxu0 %v779_v30 }
 0x4b7   :  { %813 = vmatmul.mubr.bf16.vlgmr.msra.gmra.mxu0 %v778_v31 }
 0x4b8   :  { %933 = vmatpush1.bf16.msra.mxu0 %v1296_v3 }
 0x4b9   :  { %934 = vmatprep.subr.bf16.mxu0 %v1299_v4 }
 0x4bc   :  { %935 = vmatpush1.bf16.msra.mxu0 %v1302_v5 }
 0x4bd   :  { %936 = vmatprep.subr.bf16.mxu0 %v1305_v6 }
 0x4c0   :  { %937 = vmatpush1.bf16.msra.mxu0 %v1308_v7 }
 0x4c1   :  { %938 = vmatprep.subr.bf16.mxu0 %v1310_v8 }
 0x4c4   :  { %939 = vmatpush1.bf16.msra.mxu0 %v1313_v11 }
 0x4c5   :  { %940 = vmatprep.subr.bf16.mxu0 %v1317_v14  ;;  %v766_v14 = vld [vmem:[#allocation2 + $0x5] ss:$8 sm:$0x3] }
 0x4c8   :  { %941 = vmatpush1.bf16.msra.mxu0 %v1319_v15 }
 0x4c9   :  { %942 = vmatprep.subr.bf16.mxu0 %v1322_v17 }
 0x4cc   :  { %943 = vmatpush1.bf16.msra.mxu0 %v1325_v20 }
 0x4cd   :  { %944 = vmatprep.subr.bf16.mxu0 %v1328_v21 }
 0x4d0   :  { %945 = vmatpush1.bf16.msra.mxu0 %v1331_v24 }
 0x4d1   :  { %946 = vmatprep.subr.bf16.mxu0 %v1334_v25 }
 0x4d4   :  { %947 = vmatpush1.bf16.msra.mxu0 %v1337_v28 }
 0x4d5   :  { %948 = vmatprep.subr.bf16.mxu0 %v1340_v29 }
 0x4d8   :  { %949 = vmatpush2.bf16.msra.mxu0 %v1343_v32 }
 0x4d9   :  { %950 = vmatprep.subr.bf16.mxu0 %v1347_v34 }
 0x4dc   :  { %951 = vmatpush2.bf16.msra.mxu0 %v1350_v36 }
 0x4dd   :  { %952 = vmatprep.subr.bf16.mxu0 %v1353_v38 }
 0x4e0   :  { %953 = vmatpush2.bf16.msra.mxu0 %v1356_v39 }
 0x4e1   :  { %954 = vmatprep.subr.bf16.mxu0 %v1362_v41  ;;  %v842_v41 = vld [vmem:[#allocation2 + $0x6] ss:$8 sm:$0x3] }
 0x4e4   :  { %955 = vmatpush2.bf16.msra.mxu0 %v1366_v42 }
 0x4e5   :  { %956 = vmatprep.subr.bf16.mxu0 %v1370_v43 }
 0x4e8   :  { %957 = vmatpush2.bf16.msra.mxu0 %v1374_v44 }
 0x4e9   :  { %958 = vmatprep.subr.bf16.mxu0 %v1378_v45 }
 0x4ec   :  { %959 = vmatpush2.bf16.msra.mxu0 %v1382_v46 }
 0x4ed   :  { %960 = vmatprep.subr.bf16.mxu0 %v1386_v47 }
 0x4f0   :  { %961 = vmatpush2.bf16.msra.mxu0 %v1390_v48 }
 0x4f1   :  { %962 = vmatprep.subr.bf16.mxu0 %v1394_v49 }
 0x4f4   :  { %963 = vmatpush2.bf16.msra.mxu0 %v1398_v50 }
 0x577   :  { %v814_v3 = vpop.f32.mrf.mxu0 }
 0x579   :  { %v816_v4 = vpop.f32.mrf.mxu0 }
 0x57a   :  { %v823_v5 = vcombine.low %v814_v3, %v816_v4 }
 0x57b   :  { %v818_v6 = vpop.f32.mrf.mxu0 }
 0x57c   :  { %v830_v7 = vrot.slane %v823_v5, %v1469_v12 }
 0x57d   :  { %v819_v8 = vpop.f32.mrf.mxu0 }
 0x57e   :  { %v837_v11 = vrot.slane %v830_v7, %v1469_v12 }
 0x580   :  { %v839_v15 = vadd.f32 %v837_v11, %v766_v14 }
 0x582   :  { %1169 = vtanh.f32 %v839_v15 }
 0x58f   :  { %v1170_v17 = vpop.eup %1169 }
 0x590   :  { %v851_v20 = vrot.slane %v1170_v17, %v1465_v55  ;;  %v847_v21 = vrot.slane %v1170_v17, %v1460_v53 }
 0x592   :  { %v855_v24 = vpack.c.bf16 %v851_v20, %v851_v20  ;;  %v854_v25 = vpack.c.bf16 %v847_v21, %v847_v21 }
 0x594   :  { %888 = vmatprep.mubr.bf16.mxu1 %v855_v24 }
 0x595   :  { %889 = vmatmul.mubr.bf16.vlgmr.msra.gmra.mxu1 %v854_v25 }
 0x655   :  { %v890_v28 = vpop.f32.mrf.mxu1 }
 0x657   :  { %v892_v29 = vpop.f32.mrf.mxu1 }
 0x658   :  { %v899_v32 = vcombine.low %v890_v28, %v892_v29 }
 0x659   :  { %v894_v34 = vpop.f32.mrf.mxu1 }
 0x65a   :  { %v906_v36 = vrot.slane %v899_v32, %v1469_v12 }
 0x65b   :  { %v895_v38 = vpop.f32.mrf.mxu1 }
 0x65c   :  { %v913_v39 = vrot.slane %v906_v36, %v1469_v12 }
 0x65e   :  { %v915_v42 = vadd.f32 %v913_v39, %v842_v41 }
 0x660   :  { %1171 = vtanh.f32 %v915_v42 }
 0x66d   :  { %v1172_v43 = vpop.eup %1171 }
 0x66e   :  { %v927_v44 = vrot.slane %v1172_v43, %v1465_v55  ;;  %v923_v45 = vrot.slane %v1172_v43, %v1460_v53 }
 0x670   :  { %v931_v46 = vpack.c.bf16 %v927_v44, %v927_v44  ;;  %v930_v47 = vpack.c.bf16 %v923_v45, %v923_v45 }
 0x672   :  { %964 = vmatprep.mubr.bf16.mxu0 %v931_v46 }
 0x673   :  { %965 = vmatmul.mubr.bf16.vlgmr.msra.gmra.mxu0 %v930_v47 }
 0x733   :  { %v966_v48 = vpop.f32.mrf.mxu0 }
 0x735   :  { %v968_v49 = vpop.f32.mrf.mxu0 }
 0x736   :  { %v975_v50 = vcombine.low %v966_v48, %v968_v49 }
 0x737   :  { %v970_v33 = vpop.f32.mrf.mxu0 }
 0x738   :  { %v982_v35 = vrot.slane %v975_v50, %v1469_v12 }
 0x739   :  { %v971_v37 = vpop.f32.mrf.mxu0 }
 0x73a   :  { %v989_v40 = vrot.slane %v982_v35, %v1469_v12 }
 0x73c   :  { %v991_v52 = vadd.f32 %v989_v40, %v918_v51 }
 0x73e   :  { %1173 = vtanh.f32 %v991_v52 }
 0x74b   :  { %v1174_v56 = vpop.eup %1173 }
 0x74c   :  { %v994_v57 = vmul.f32 %v1174_v56, %v993_v54 }
 0x74e   :  { %v999_v58 = vrot.slane %v994_v57, %v1460_v53  ;;  %v1003_v59 = vrot.slane %v994_v57, %v1465_v55 }
 0x750   :  { %v1007_v60 = vsel %vm1006_vm0, %v999_v58, 0.0  ;;  %v1008_v61 = vsel %vm1006_vm0, %v1003_v59, 0.0 }
 0x751   :  { %v1009_v62 = vadd.f32 %v1008_v61, %v1007_v60 }
 0x753   :  { %1010 = vadd.xlane.f32.xlu0 %v1009_v62 }
 0x7dc   :  { %v1011_v12 = vpop.xlane.xlu0 %1010 }
 0x7dd   :  { %v1013_v0 = vadd.f32 %v1012_v63, %v1011_v12 }
 0x7df   :  { %1015 = vst.msk [vmem:[#allocation9] sm:$0x1] %vm1014_vm1, %v1013_v0 }
 0x7e0   :  { %1226 = shalt.err (!%p1223_p0)
}
 0x7e1   :  { %1025 = dma.vmem_to_hbm [thread:$0]  %s1023_s13, 16, %s1673_s6, [#allocation6]  }
 0x7e2   :  { %1239 = dma.done.wait [#allocation6], 16  }
 0x7e3   :  { %1240 = vsyncadd [#allocation6], 4294967280 }
 0x7e4   :  { %1029 = vsyncpa [#allocation5], 1 }
 0x7e5   :  { %1030 = vsyncpa [#allocation8], 1 }
 0x7e6   :  { %1031 = vsyncpa [#allocation6], 1 }

</bundles_post_ra>
